<compile_context>
chip_gen: v7x
topology: tpu7x:2x2x1
jax: 0.10.0
libtpu: 0.0.40
codegen_flags: <defaults>
</compile_context>

<pallas_src>
import functools

import jax
import jax.numpy as jnp
from jax import lax
from jax.experimental import pallas as pl
from jax.experimental.pallas import tpu as pltpu

EPS = 1e-5
_LANE_CHOICES = (2048, 1024, 512, 256, 128)
_VMEM_LIMIT = 32 * 1024 * 1024


def _cdiv(a, b):
    return -(-a // b)


def _round_up(a, b):
    return _cdiv(a, b) * b


# --------------------------------------------------------------------------- #
# Fused path (input resident in VMEM): stats + normalize in one kernel.
# --------------------------------------------------------------------------- #
def _fused_kernel(gb_ref, x_ref, o_ref, *, inv_m, eps):
    x = x_ref[...].astype(jnp.float32)
    total = jnp.sum(x)
    total_sq = jnp.sum(x * x)
    mean = total * inv_m
    # Biased (training-mode) variance; clamp tiny negative round-off of E[x^2]-mean^2.
    var = jnp.maximum(total_sq * inv_m - mean * mean, 0.0)
    inv_std = lax.rsqrt(var + eps)
    scale = gb_ref[0] * inv_std            # gamma * inv_std
    shift = gb_ref[1] - mean * scale       # beta - mean * scale
    o_ref[...] = (x * scale + shift).astype(o_ref.dtype)


# --------------------------------------------------------------------------- #
# Two-pass path, phase 1: streaming sum / sum-of-squares.
# Grid = (splits, tiles_per_split); the leading "parallel" axis lets v7x's two
# TensorCores each reduce half the rows into their own partial outputs.
# --------------------------------------------------------------------------- #
def _stats_kernel(x_ref, psum_ref, psq_ref, sum_ref, sq_ref, *,
                  tr, rows_valid, tiles_per_split, need_mask):
    t = pl.program_id(1)

    @pl.when(t == 0)
    def _init():
        sum_ref[...] = jnp.zeros_like(sum_ref)
        sq_ref[...] = jnp.zeros_like(sq_ref)

    x = x_ref[...].astype(jnp.float32)
    if need_mask:
        # Logical (unclamped) tile id; rows at/after rows_valid are padding / duplicates.
        g = pl.program_id(0) * tiles_per_split + t
        rows = g * tr + lax.broadcasted_iota(jnp.int32, x.shape, 0)
        x = jnp.where(rows < rows_valid, x, 0.0)

    # Single pass over the tile: lane-parallel partial sums (VALU adds, hidden under DMA).
    sum_ref[...] += jnp.sum(x, axis=0, keepdims=True)
    sq_ref[...] += jnp.sum(x * x, axis=0, keepdims=True)

    @pl.when(t == pl.num_programs(1) - 1)
    def _finalize():
        psum_ref[...] = jnp.sum(sum_ref[...], axis=1, keepdims=True)   # (1, 1)
        psq_ref[...] = jnp.sum(sq_ref[...], axis=1, keepdims=True)     # (1, 1)


# --------------------------------------------------------------------------- #
# Two-pass path, phase 2: y = x * scale + shift (scale/shift in SMEM).
# --------------------------------------------------------------------------- #
def _apply_kernel(ss_ref, x_ref, o_ref):
    scale = ss_ref[0]
    shift = ss_ref[1]
    o_ref[...] = (x_ref[...].astype(jnp.float32) * scale + shift).astype(o_ref.dtype)


@functools.partial(
    jax.jit,
    static_argnames=("eps", "target_block_bytes", "fuse_vmem_bytes", "num_splits"))
def spatial_batch_norm(x, gamma, beta, *, eps=EPS, target_block_bytes=4 << 20,
                       fuse_vmem_bytes=4 << 20, num_splits=2):
    """Training-mode BatchNorm2d(num_features=1) forward. x: (N, 1, H, W)."""
    N, C, H, W = x.shape
    assert C == 1, "SpatialBatchNormLayer uses BatchNorm2d(num_features=1)"
    M = N * C * H * W
    itemsize = jnp.dtype(x.dtype).itemsize
    row_align = max(8, 32 // itemsize)        # (8,128) f32 tile, (16,128) bf16 tile
    inv_m = 1.0 / float(M)

    # Lane-dense slab: widest 128-multiple lane count dividing M -> pure reshape (no pad,
    # no extra HBM pass).  Rare fallback: pad up to the next multiple of 128 only.
    lanes = next((l for l in _LANE_CHOICES if M % l == 0), None)
    padded = lanes is None
    if padded:
        lanes = 128
    Mp = _round_up(M, lanes)
    x_flat = x.reshape(-1)
    if padded:
        x_flat = jnp.pad(x_flat, (0, Mp - M))  # zeros are stats-neutral (divide by true M)
    R = Mp // lanes
    x2d = x_flat.reshape(R, lanes)

    if Mp * itemsize <= fuse_vmem_bytes:
        # ---- Fused single kernel: x stays resident in VMEM (2 HBM passes total). ----
        gb = jnp.stack([gamma.reshape(()).astype(jnp.float32),
                        beta.reshape(()).astype(jnp.float32)])
        y2d = pl.pallas_call(
            functools.partial(_fused_kernel, inv_m=inv_m, eps=float(eps)),
            out_shape=jax.ShapeDtypeStruct((R, lanes), x.dtype),
            grid_spec=pltpu.PrefetchScalarGridSpec(
                num_scalar_prefetch=0,
                grid=(1,),
                in_specs=[
                    pl.BlockSpec(memory_space=pltpu.MemorySpace.SMEM),   # (gamma, beta)
                    pl.BlockSpec((R, lanes), lambda i: (0, 0)),
                ],
                out_specs=pl.BlockSpec((R, lanes), lambda i: (0, 0)),
            ),
            compiler_params=pltpu.CompilerParams(
                dimension_semantics=("arbitrary",),
                vmem_limit_bytes=_VMEM_LIMIT),
        )(gb, x2d)
    else:
        # ---- Two-pass streaming path (~4 MiB blocks, near HBM roofline). ----
        rows_per_block = (target_block_bytes // (lanes * itemsize)) // row_align * row_align
        tr = max(row_align, rows_per_block)
        tr = min(tr, _round_up(R, row_align))
        num_tiles = _cdiv(R, tr)
        ns = num_splits if num_tiles >= num_splits else 1
        tps = _cdiv(num_tiles, ns)
        need_mask = (ns * tps * tr) != R

        # Phase 1: per-split partial (sum, sumsq).  scale/shift finalized in JAX (tiny).
        psum, psq = pl.pallas_call(
            functools.partial(_stats_kernel, tr=tr, rows_valid=R,
                              tiles_per_split=tps, need_mask=need_mask),
            out_shape=(jax.ShapeDtypeStruct((ns, 1), jnp.float32),
                       jax.ShapeDtypeStruct((ns, 1), jnp.float32)),
            grid_spec=pltpu.PrefetchScalarGridSpec(
                num_scalar_prefetch=0,
                grid=(ns, tps),
                in_specs=[pl.BlockSpec(
                    (tr, lanes),
                    lambda s, t: (jnp.minimum(s * tps + t, num_tiles - 1), 0))],
                out_specs=[pl.BlockSpec((1, 1), lambda s, t: (s, 0)),
                           pl.BlockSpec((1, 1), lambda s, t: (s, 0))],
                scratch_shapes=[pltpu.VMEM((1, lanes), jnp.float32),   # running sum(x)
                                pltpu.VMEM((1, lanes), jnp.float32)],  # running sum(x*x)
            ),
            compiler_params=pltpu.CompilerParams(
                dimension_semantics=("parallel", "arbitrary"),
                vmem_limit_bytes=_VMEM_LIMIT),
        )(x2d)

        # Tiny scalar epilogue (fused by XLA under jit).
        total = jnp.sum(psum)
        total_sq = jnp.sum(psq)
        mean = total * inv_m
        var = jnp.maximum(total_sq * inv_m - mean * mean, 0.0)
        inv_std = lax.rsqrt(var + eps)
        scale = gamma.reshape(()).astype(jnp.float32) * inv_std
        shift = beta.reshape(()).astype(jnp.float32) - mean * scale
        scale_shift = jnp.stack([scale, shift])            # (2,) -> SMEM scalars

        # Phase 2: elementwise normalize; when we padded, the output aliases the padded temp.
        y2d = pl.pallas_call(
            _apply_kernel,
            out_shape=jax.ShapeDtypeStruct((R, lanes), x.dtype),
            grid_spec=pltpu.PrefetchScalarGridSpec(
                num_scalar_prefetch=0,
                grid=(num_tiles,),
                in_specs=[
                    pl.BlockSpec(memory_space=pltpu.MemorySpace.SMEM),  # (scale, shift)
                    pl.BlockSpec((tr, lanes), lambda i: (i, 0)),
                ],
                out_specs=pl.BlockSpec((tr, lanes), lambda i: (i, 0)),
            ),
            compiler_params=pltpu.CompilerParams(
                dimension_semantics=("parallel",),
                vmem_limit_bytes=_VMEM_LIMIT),
            input_output_aliases=({1: 0} if padded else {}),
        )(scale_shift, x2d)

    y_flat = y2d.reshape(-1)
    if padded:
        y_flat = y_flat[:M]
    return y_flat.reshape(N, C, H, W)


if __name__ == "__main__":
    key = jax.random.PRNGKey(0)
    N, C, H, W = 2, 1, 16, 16
    x = jax.random.normal(key, (N, C, H, W), dtype=jnp.float32)

    # nn.BatchNorm2d default parameter init.
    gamma = jnp.ones((C,), jnp.float32)   # weight
    beta = jnp.zeros((C,), jnp.float32)   # bias

    def ref_bn(xx):
        mean = jnp.mean(xx, axis=(0, 2, 3), keepdims=True)
        var = jnp.mean((xx - mean) ** 2, axis=(0, 2, 3), keepdims=True)
        return ((xx - mean) / jnp.sqrt(var + EPS) * gamma.reshape(1, C, 1, 1)
                + beta.reshape(1, C, 1, 1))

    # 1) Small input -> fused single-kernel (VMEM-resident) path.
    y = jax.block_until_ready(spatial_batch_norm(x, gamma, beta))
    assert jnp.allclose(y, ref_bn(x), atol=1e-5, rtol=1e-5)

    # 2) Two-pass streaming path: multi-tile grid, 2-way megacore split, ragged last
    #    tile masked in-kernel (M=3456 -> lanes=128, R=27, tr=8, grid=(2,2)).
    x2 = jax.random.normal(jax.random.PRNGKey(1), (1, 1, 48, 72), jnp.float32) * 3.0 + 1.5
    y2 = jax.block_until_ready(
        spatial_batch_norm(x2, gamma, beta, target_block_bytes=4096, fuse_vmem_bytes=0))
    assert jnp.allclose(y2, ref_bn(x2), atol=1e-4, rtol=1e-4)

    # 3) Fallback path: M=130 not a multiple of 128 -> minimal pad + aliased phase-2 output.
    x3 = jax.random.normal(jax.random.PRNGKey(2), (1, 1, 10, 13), jnp.float32) * 0.5 - 2.0
    y3 = jax.block_until_ready(spatial_batch_norm(x3, gamma, beta, fuse_vmem_bytes=0))
    assert jnp.allclose(y3, ref_bn(x3), atol=1e-4, rtol=1e-4)

    print("KERNEL_OK")
</pallas_src>

<mosaic_0001>
module attributes {stable_mosaic.version = 11 : i64} {
  func.func @_fused_kernel(%arg0: i32, %arg1: memref<2xf32, #tpu.memory_space<smem>>, %arg2: memref<1x512xf32, #tpu.memory_space<vmem>>, %arg3: memref<1x512xf32, #tpu.memory_space<vmem>>) attributes {dimension_semantics = [#tpu.dimension_semantics<arbitrary>], iteration_bounds = array<i64: 1>, scalar_prefetch = 0 : i64, scratch_operands = 0 : i64, tpu.core_type = #tpu.core_type<tc>, window_params = [{transform_indices = @transform_0, window_bounds = array<i64: 2>}, {pipeline_mode = #tpu.pipeline_mode<synchronous>, transform_indices = @transform_1, window_bounds = array<i64: 1, 512>}, {pipeline_mode = #tpu.pipeline_mode<synchronous>, transform_indices = @transform_2, window_bounds = array<i64: 1, 512>}]} {
    %c0 = arith.constant 0 : index
    %c0_0 = arith.constant 0 : index
    %0 = vector.load %arg2[%c0, %c0_0] : memref<1x512xf32, #tpu.memory_space<vmem>>, vector<1x512xf32>
    %1 = vector.shape_cast %0 : vector<1x512xf32> to vector<1x1x512xf32>
    %cst = arith.constant dense<0.000000e+00> : vector<1xf32>
    %2 = vector.multi_reduction <add>, %1, %cst [1, 2] : vector<1x1x512xf32> to vector<1xf32>
    %3 = vector.shape_cast %2 : vector<1xf32> to vector<1x1x1xf32>
    %4 = vector.extract %3[0, 0, 0] : f32 from vector<1x1x1xf32>
    %5 = arith.mulf %0, %0 : vector<1x512xf32>
    %6 = vector.shape_cast %5 : vector<1x512xf32> to vector<1x1x512xf32>
    %cst_1 = arith.constant dense<0.000000e+00> : vector<1xf32>
    %7 = vector.multi_reduction <add>, %6, %cst_1 [1, 2] : vector<1x1x512xf32> to vector<1xf32>
    %8 = vector.shape_cast %7 : vector<1xf32> to vector<1x1x1xf32>
    %9 = vector.extract %8[0, 0, 0] : f32 from vector<1x1x1xf32>
    %cst_2 = arith.constant 0.001953125 : f32
    %10 = arith.mulf %4, %cst_2 : f32
    %cst_3 = arith.constant 0.001953125 : f32
    %11 = arith.mulf %9, %cst_3 : f32
    %12 = arith.mulf %10, %10 : f32
    %13 = arith.subf %11, %12 : f32
    %cst_4 = arith.constant 0.000000e+00 : f32
    %14 = arith.maximumf %13, %cst_4 : f32
    %cst_5 = arith.constant 9.99999974E-6 : f32
    %15 = arith.addf %14, %cst_5 : f32
    %16 = math.rsqrt %15 : f32
    %c0_6 = arith.constant 0 : index
    %17 = memref.load %arg1[%c0_6] : memref<2xf32, #tpu.memory_space<smem>>
    %18 = arith.mulf %17, %16 : f32
    %c1 = arith.constant 1 : index
    %19 = memref.load %arg1[%c1] : memref<2xf32, #tpu.memory_space<smem>>
    %20 = arith.mulf %10, %18 : f32
    %21 = arith.subf %19, %20 : f32
    %22 = vector.broadcast %18 : f32 to vector<1x512xf32>
    %23 = arith.mulf %0, %22 : vector<1x512xf32>
    %24 = vector.broadcast %21 : f32 to vector<1x512xf32>
    %25 = arith.addf %23, %24 : vector<1x512xf32>
    %c0_7 = arith.constant 0 : index
    %c0_8 = arith.constant 0 : index
    %26 = vector.load %arg3[%c0_7, %c0_8] : memref<1x512xf32, #tpu.memory_space<vmem>>, vector<1x512xf32>
    tpu.vector_store %arg3[%c0_7, %c0_8], %25 {strides = array<i32>} : memref<1x512xf32, #tpu.memory_space<vmem>>, vector<1x512xf32>,
    return
  }
  func.func @transform_0(%arg0: i32) -> i32 {
    %c0_i32 = arith.constant 0 : i32
    %c0_i32_0 = arith.constant 0 : i32
    return %c0_i32 : i32
  }
  func.func @transform_1(%arg0: i32) -> (i32, i32) {
    %c0_i32 = arith.constant 0 : i32
    %c0_i32_0 = arith.constant 0 : i32
    %c0_i32_1 = arith.constant 0 : i32
    return %c0_i32, %c0_i32_0 : i32, i32
  }
  func.func @transform_2(%arg0: i32) -> (i32, i32) {
    %c0_i32 = arith.constant 0 : i32
    %c0_i32_0 = arith.constant 0 : i32
    %c0_i32_1 = arith.constant 0 : i32
    return %c0_i32, %c0_i32_0 : i32, i32
  }
}

</mosaic_0001>

<bundles_post_ra>
// kernel: spatial_batch_norm.1
= control target key start
LH: loop header
LB: loop body
LE: loop exit
PB: predicated region body
PF: predicated region fallthrough
CT: control target
= control target key end

     0   :  { %7 = vsyncpa [#allocation3], 0  ;;  %s199_s0 = inlined_call_operand.vmem [shape: f32[2], index: 0, kind: input, shape index: {}]   ;;  %s200_s1 = inlined_call_operand.vmem [shape: f32[1,512], index: 1, kind: input, shape index: {}]   ;;  %s201_s2 = inlined_call_operand.vmem [shape: f32[1,512], index: 2, kind: output, shape index: {}]  }
   0x1   :  { %s14_s11 = sshll.u32 %s199_s0, 4  ;;  %s15_s11 = int_to_ptr.vmem [resolvable:$true] %s14_s11 }
   0x2   :  { %s140_s12 = scalar_lea.vmem %s15_s11, 16  ;;  %p145_p1 = scmp.lt.s32.totalorder %s15_s11, %s15_s11 }
   0x3   :  { %p141_p0 = scmp.ne.s32.totalorder %s15_s11, %s140_s12  ;;  %p146_p2 = scmp.lt.s32.totalorder %s140_s12, %s140_s12 }
   0x5   :  { %p147_p3 = por %p146_p2, %p145_p1 }
   0x7   :  { %p148_p4 = pnand %p147_p3, %p141_p0 }
   0x9   :  { %151 = shalt.err (!%p148_p4)
}
   0xa   :  { %s154_s13 = smov [#allocation2]  }
   0xb   :  { %17 = dma.vmem_to_smem %s15_s11, 16, %s154_s13, [#allocation3]  }
   0xc   :  { %152 = dma.done.wait [#allocation3], 16  }
   0xd   :  { %153 = vsyncadd [#allocation3], 4294967280 }
   0xe   :  { %23 = sfence }
   0xf   :  { %v26_v0 = vlaneseq  ;;  %v177_v1 = vld [vmem:[%s200_s1] sm:$0xf]  ;;  %vm46_vm0 = vcmask 1040384   ;;  %s155_s20 = smov 0.0   ;;  %s110_s23 = sld [smem:[#allocation2]] }
  0x10   :  { %v63_v3 = vmul.f32 %v177_v1, %v177_v1  ;;  %s129_s24 = sld [smem:[#allocation2 + $0x1]] }
  0x11   :  { %v27_v2 = vshrl.u32 %v26_v0, 7  ;;  %vm121_vm1 = vcmp.lt.s32.totalorder %v26_v0, 512 }
  0x13   :  { %v28_v4 = vsub.s32 0, %v27_v2  ;;  %v32_v5 = vsub.s32 1, %v27_v2  ;;  %v36_v6 = vsub.s32 2, %v27_v2  ;;  %v40_v7 = vsub.s32 3, %v27_v2 }
  0x15   :  { %v29_v8 = vrot.slane %v177_v1, %v28_v4  ;;  %v33_v9 = vrot.slane %v177_v1, %v32_v5  ;;  %v37_v10 = vrot.slane %v177_v1, %v36_v6  ;;  %v41_v11 = vrot.slane %v177_v1, %v40_v7 }
  0x16   :  { %v68_v12 = vrot.slane %v63_v3, %v28_v4  ;;  %v72_v13 = vrot.slane %v63_v3, %v32_v5  ;;  %v76_v14 = vrot.slane %v63_v3, %v36_v6  ;;  %v80_v18 = vrot.slane %v63_v3, %v40_v7 }
  0x17   :  { %v47_v15 = vsel %vm46_vm0, %v29_v8, 0.0  ;;  %v48_v16 = vsel %vm46_vm0, %v33_v9, 0.0  ;;  %v50_v17 = vsel %vm46_vm0, %v37_v10, 0.0  ;;  %v52_v23 = vsel %vm46_vm0, %v41_v11, 0.0 }
  0x18   :  { %v49_v19 = vadd.f32 %v48_v16, %v47_v15  ;;  %v85_v20 = vsel %vm46_vm0, %v68_v12, 0.0  ;;  %v86_v21 = vsel %vm46_vm0, %v72_v13, 0.0  ;;  %v88_v22 = vsel %vm46_vm0, %v76_v14, 0.0 }
  0x19   :  { %v87_v24 = vadd.f32 %v86_v21, %v85_v20  ;;  %v90_v27 = vsel %vm46_vm0, %v80_v18, 0.0 }
  0x1a   :  { %v51_v25 = vadd.f32 %v50_v17, %v49_v19 }
  0x1b   :  { %v89_v26 = vadd.f32 %v88_v22, %v87_v24 }
  0x1c   :  { %v53_v28 = vadd.f32 %v52_v23, %v51_v25 }
  0x1d   :  { %v91_v29 = vadd.f32 %v90_v27, %v89_v26 }
  0x1e   :  { %54 = vadd.xlane.f32.xlu0 %v53_v28 }
  0x22   :  { %92 = vadd.xlane.f32.xlu0 %v91_v29 }
  0xab   :  { %v55_v30 = vpop.xlane.xlu0 %54 }
  0xac   :  { %v56_v31 = vrot.slane %v55_v30, 4 }
  0xae   :  { %v57_v32 = vadd.f32 %v56_v31, %v55_v30 }
  0xaf   :  { %v93_v33 = vpop.xlane.xlu0 %92 }
  0xb0   :  { %v58_v34 = vrot.slane %v57_v32, 2  ;;  %v94_v35 = vrot.slane %v93_v33, 4 }
  0xb2   :  { %v95_v36 = vadd.f32 %v94_v35, %v93_v33  ;;  %v59_v37 = vadd.f32 %v58_v34, %v57_v32 }
  0xb4   :  { %v96_v38 = vrot.slane %v95_v36, 2  ;;  %v60_v39 = vrot.slane %v59_v37, 1 }
  0xb6   :  { %v97_v40 = vadd.f32 %v96_v38, %v95_v36  ;;  %v61_v41 = vadd.f32 %v60_v39, %v59_v37 }
  0xb8   :  { %130 = vpush %v61_v41  ;;  %v98_v42 = vrot.slane %v97_v40, 1 }
  0xba   :  { %v99_v43 = vadd.f32 %v98_v42, %v97_v40 }
  0xbc   :  { %132 = vpush %v99_v43 }
  0xe9   :  { %s131_s0 = spop %130 }
  0xea   :  { %s101_s1 = smul.f32 0.001953125, %s131_s0 }
  0xec   :  { %s103_s16 = smul.f32 %s101_s1, %s101_s1 }
  0xed   :  { %s133_s17 = spop %132 }
  0xee   :  { %s102_s18 = smul.f32 0.001953125, %s133_s17 }
  0xf0   :  { %s104_s19 = ssub.f32 %s102_s18, %s103_s16 }
  0xf2   :  { %s105_s21 = smax.f32 %s155_s20, %s104_s19 }
  0xf3   :  { %s106_s22 = sadd.f32 1e-05, %s105_s21 }
  0xf5   :  { %v107_v44 = vstv %s106_s22 }
  0xf6   :  { %138 = vrsqrt.f32 %v107_v44 }
 0x100   :  { %v139_v45 = vpop.eup %138 }
 0x101   :  { %134 = vpush %v139_v45 }
 0x132   :  { %s135_s25 = spop %134 }
 0x133   :  { %s111_s26 = smul.f32 %s135_s25, %s110_s23 }
 0x135   :  { %s113_s27 = smul.f32 %s111_s26, %s101_s1  ;;  %v115_v46 = vstv %s111_s26 }
 0x136   :  { %v116_v47 = vmul.f32 %v115_v46, %v177_v1 }
 0x137   :  { %s114_s28 = ssub.f32 %s129_s24, %s113_s27 }
 0x139   :  { %v117_v48 = vstv %s114_s28 }
 0x13a   :  { %v118_v49 = vadd.f32 %v117_v48, %v116_v47 }
 0x13c   :  { %123 = vst.msk [vmem:[%s201_s2] sm:$0xf] %vm121_vm1, %v118_v49 }
 0x13d   :  { %128 = vsyncpa [#allocation3], 1 }

</bundles_post_ra>
